<compile_context>
chip_gen: v7x
topology: tpu7x:2x2x1
jax: 0.10.0
libtpu: 0.0.40
codegen_flags: <defaults>
</compile_context>

<pallas_src>
import functools
import math
from typing import NamedTuple, Tuple

import jax
import jax.numpy as jnp
from jax.experimental import pallas as pl
from jax.experimental.pallas import tpu as pltpu


class Cfg(NamedTuple):
    len_window: int
    itcn_d: int
    ebd_d: int
    kernel_list: Tuple[int, ...]
    n_itcn_layers: int
    n_neurons: int
    t_repetition: int
    tau: float


_HI = jax.lax.Precision.HIGHEST


def _round_up(a, b):
    return -(-a // b) * b


# ---------------------------------------------------------------------------
# Fused RegionEmbedder kernel:
#   input Linear -> n_itcn_layers x (merged 3-branch dilated causal conv) -> MLP head
# ---------------------------------------------------------------------------
def _make_region_kernel(n_layers, k_max, T, C, rows, pad, compute_dtype):
    """rows = G*T rows per block (G whole samples, time fastest); pad = zero prefix."""

    def kernel(x_ref, win_ref, bin_ref, wc_ref, bc_ref,
               w1_ref, b1_ref, w2_ref, b2_ref, o_ref, h_scr):
        # Zero the causal left-padding prefix ONCE (scratch persists across grid
        # steps; the select-mask below keeps prefix bytes out of arithmetic anyway,
        # so this is safety only, not correctness).
        @pl.when(pl.program_id(0) == 0)
        def _():
            h_scr[pl.ds(0, pad), :] = jnp.zeros((pad, C), compute_dtype)

        # ---- input Linear:  (rows, L) @ (L, C), f32 accumulation on the MXU
        h = (jnp.dot(x_ref[...], win_ref[...], preferred_element_type=jnp.float32)
             + bin_ref[...])

        # per-row time index within its own sample (blocks hold whole samples)
        t_in_sample = jax.lax.broadcasted_iota(jnp.int32, (rows, 1), 0) % T

        # ---- MSTC stack (branches merged: one (C, C) weight per causal shift)
        for layer in range(n_layers):
            dil = 1 << layer
            hc = h.astype(compute_dtype)          # cast once per layer
            h_scr[pl.ds(pad, rows), :] = hc       # aligned store; taps reload in bf16
            acc = jnp.zeros((rows, C), jnp.float32)
            for j in range(k_max):
                shift = j * dil
                if shift >= T:   # tap lies entirely in the zero padding -> no work
                    continue
                if shift == 0:
                    xs = hc
                else:
                    # x[t - shift]: static-offset window read from the zero-prefixed
                    # scratch; select-mask rows whose source would leak across a
                    # sample boundary (select, NOT multiply -> stale bytes harmless).
                    xs = h_scr[pl.ds(pad - shift, rows), :]
                    xs = jnp.where(t_in_sample >= shift, xs, 0.0)
                acc = acc + jnp.dot(xs, wc_ref[layer * k_max + j],
                                    preferred_element_type=jnp.float32)
            h = jnp.maximum(acc + bc_ref[layer], 0.0)

        # ---- 2-layer MLP head (row-wise; the layout permutation is applied to the
        #      narrow E-wide output in the wrapper, not to the C-wide activation)
        h1 = jnp.maximum(
            jnp.dot(h.astype(compute_dtype), w1_ref[...],
                    preferred_element_type=jnp.float32) + b1_ref[...], 0.0)
        o_ref[...] = (jnp.dot(h1.astype(compute_dtype), w2_ref[...],
                              preferred_element_type=jnp.float32) + b2_ref[...])

    return kernel


def _merge_branch_weights(conv_params, kernel_list, k_max, C):
    """Pack the 3 branch convs of one MSTC layer into one (k_max, C, C) weight/shift."""
    C3 = C // 3
    wc = jnp.zeros((k_max, C, C), jnp.float32)
    biases = []
    for i, K in enumerate(kernel_list):
        w, b = conv_params[i]                      # (K, C, C3), (1, C3)
        # tap j (shift = j*dilation) uses original tap K-1-j  ->  reverse the taps
        wc = wc.at[:K, :, i * C3:(i + 1) * C3].set(w[::-1])
        biases.append(b)
    return wc, jnp.concatenate(biases, axis=-1)    # (k_max, C, C), (1, C)


def region_embedder_forward(x, params, *, cfg, samples_per_block=None,
                            compute_dtype=jnp.bfloat16):
    B, N, T, L = x.shape
    C = cfg.itcn_d
    E = cfg.ebd_d
    n_layers = cfg.n_itcn_layers
    k_max = max(cfg.kernel_list)
    M = B * N

    # ---- choose the sample-group size G: G whole samples/block, G*T rows % 8 == 0,
    #      and (when M allows it) at least 2 grid steps so v7x's 2nd TC has work.
    align = 8 // math.gcd(T, 8)
    if samples_per_block is None:
        samples_per_block = max(1, 4096 // T)      # ~4k rows/block (amortize overhead)
    G = max(align, (samples_per_block // align) * align)
    half = _round_up((M + 1) // 2, align)          # cap -> grid >= 2 steps if possible
    G = min(G, max(align, half))
    Mp = _round_up(M, G)
    rows = G * T

    # zero-prefix rows: only as deep as the largest causal shift actually used
    max_shift = (k_max - 1) * (1 << (n_layers - 1)) if n_layers > 0 else 0
    pad = max(8, _round_up(min(max_shift, T), 8))

    # ---- merge conv branches per layer, stack layers
    wcs, bcs = [], []
    for layer in range(n_layers):
        wc, bc = _merge_branch_weights(params["conv"][layer], cfg.kernel_list,
                                       k_max, C)
        wcs.append(wc)
        bcs.append(bc)
    wc_all = jnp.stack(wcs).reshape(n_layers * k_max, C, C).astype(compute_dtype)
    bc_all = jnp.stack(bcs)                        # (n_layers, 1, C) float32

    # ---- flatten input to (Mp*T, L); pad with zero samples if M % G != 0
    x_rows = x.reshape(M, T, L)
    if Mp != M:
        x_rows = jnp.concatenate(
            [x_rows, jnp.zeros((Mp - M, T, L), x.dtype)], axis=0)
    x_rows = x_rows.reshape(Mp * T, L).astype(compute_dtype)

    w_in = params["W_in"].astype(compute_dtype)
    w1 = params["W1"].astype(compute_dtype)
    w2 = params["W2"].astype(compute_dtype)

    kernel = _make_region_kernel(n_layers, k_max, T, C, rows, pad, compute_dtype)

    # rough per-block VMEM budget (double-buffered I/O + scratch + weights + temps);
    # only raise vmem_limit_bytes when production shapes push past the scoped default.
    isz = jnp.dtype(compute_dtype).itemsize
    est_vmem = (2 * rows * L * isz + 2 * rows * E * 4
                + (pad + rows) * C * isz
                + 2 * (L * C + n_layers * k_max * C * C + C * C + C * E) * isz
                + 8 * rows * C * 4)
    cp_kwargs = dict(dimension_semantics=("parallel",))
    if est_vmem > (30 << 20):
        cp_kwargs["vmem_limit_bytes"] = int(min(est_vmem + (4 << 20), 60 << 20))

    out = pl.pallas_call(
        kernel,
        out_shape=jax.ShapeDtypeStruct((Mp * T, E), jnp.float32),
        grid_spec=pltpu.PrefetchScalarGridSpec(
            num_scalar_prefetch=0,
            grid=(Mp // G,),
            in_specs=[
                pl.BlockSpec((rows, L), lambda i: (i, 0)),                    # x rows
                pl.BlockSpec((L, C), lambda i: (0, 0)),                       # W_in
                pl.BlockSpec((1, C), lambda i: (0, 0)),                       # b_in
                pl.BlockSpec((n_layers * k_max, C, C), lambda i: (0, 0, 0)),  # merged W
                pl.BlockSpec((n_layers, 1, C), lambda i: (0, 0, 0)),          # merged b
                pl.BlockSpec((C, C), lambda i: (0, 0)),                       # W1
                pl.BlockSpec((1, C), lambda i: (0, 0)),                       # b1
                pl.BlockSpec((C, E), lambda i: (0, 0)),                       # W2
                pl.BlockSpec((1, E), lambda i: (0, 0)),                       # b2
            ],
            out_specs=pl.BlockSpec((rows, E), lambda i: (i, 0)),
            scratch_shapes=[pltpu.VMEM((pad + rows, C), compute_dtype)]),
        compiler_params=pltpu.CompilerParams(**cp_kwargs),
    )(x_rows, w_in, params["b_in"], wc_all, bc_all,
      w1, params["b1"], w2, params["b2"])

    out = out[: M * T]
    # (M*T, E) == (B, N, T, E) row-major; permute only the narrow E-wide output
    return out.reshape(B, N, T, E).transpose(0, 2, 1, 3)


# ---------------------------------------------------------------------------
# Fused SpatialAttention + scaling kernel, tiled over B*T rows.
#   mean over E (as a matmul) -> Linear -> ReLU -> Linear -> Sigmoid ->
#   expand over E (as a matmul) -> multiply into x_ebd, all on one VMEM block.
# ---------------------------------------------------------------------------
def _attn_scale_kernel(x_ref, mmean_ref, wa1_ref, wa2_ref, mexp_ref,
                       attn_ref, scaled_ref):
    x = x_ref[...]                                                     # (R, N*E)
    xm = jnp.dot(x, mmean_ref[...], preferred_element_type=jnp.float32)   # (R, N)
    h = jnp.maximum(
        jnp.dot(xm, wa1_ref[...], preferred_element_type=jnp.float32), 0.0)
    a = jax.nn.sigmoid(
        jnp.dot(h, wa2_ref[...], preferred_element_type=jnp.float32))     # (R, N)
    attn_ref[...] = a
    scale = jnp.dot(a, mexp_ref[...], preferred_element_type=jnp.float32)  # (R, N*E)
    scaled_ref[...] = x * scale


def spatial_attention_scale_forward(x_ebd, wa1, wa2):
    B, T, N, E = x_ebd.shape
    Ne = wa1.shape[1]
    BT, NE = B * T, N * E

    # block rows: <=512, multiple of 8, and >=2 grid steps when BT allows it (v7x)
    R = _round_up(min(512, max(8, (BT + 1) // 2)), 8)
    R = min(R, _round_up(BT, 8))
    BTp = _round_up(BT, R)

    x_flat = x_ebd.reshape(BT, NE)
    if BTp != BT:
        x_flat = jnp.concatenate(
            [x_flat, jnp.zeros((BTp - BT, NE), x_flat.dtype)], axis=0)

    eye_n = jnp.eye(N, dtype=jnp.float32)
    mmean = jnp.repeat(eye_n, E, axis=0) * (1.0 / E)   # (N*E, N): mean over E
    mexp = jnp.repeat(eye_n, E, axis=1)                # (N, N*E): expand over E

    attn, scaled = pl.pallas_call(
        _attn_scale_kernel,
        out_shape=(jax.ShapeDtypeStruct((BTp, N), jnp.float32),
                   jax.ShapeDtypeStruct((BTp, NE), jnp.float32)),
        grid=(BTp // R,),
        in_specs=[
            pl.BlockSpec((R, NE), lambda i: (i, 0)),     # x_ebd slab (lane-dense N*E)
            pl.BlockSpec((NE, N), lambda i: (0, 0)),     # mean matrix
            pl.BlockSpec((N, Ne), lambda i: (0, 0)),     # Wa1
            pl.BlockSpec((Ne, N), lambda i: (0, 0)),     # Wa2
            pl.BlockSpec((N, NE), lambda i: (0, 0)),     # expand matrix
        ],
        out_specs=[
            pl.BlockSpec((R, N), lambda i: (i, 0)),      # attn
            pl.BlockSpec((R, NE), lambda i: (i, 0)),     # attn * x_ebd
        ],
        compiler_params=pltpu.CompilerParams(dimension_semantics=("parallel",)),
    )(x_flat, mmean, wa1, wa2, mexp)

    attn = attn[:BT].reshape(B, T, N, 1)
    scaled = scaled[:BT].reshape(B, T, N, E)
    return attn, scaled


# ---------------------------------------------------------------------------
# DygLearner forward
# ---------------------------------------------------------------------------
@functools.partial(jax.jit,
                   static_argnames=("cfg", "samples_per_block", "compute_dtype"))
def dyg_learner_forward(x, params, *, cfg, samples_per_block=None,
                        compute_dtype=jnp.bfloat16):
    x_ebd = region_embedder_forward(
        x, params, cfg=cfg, samples_per_block=samples_per_block,
        compute_dtype=compute_dtype)
    node_features = x_ebd
    attn, x_ebd_scaled = spatial_attention_scale_forward(
        x_ebd, params["Wa1"], params["Wa2"])
    # TODO(synk): construct_graph() and get_coo() are not defined in the reference
    # module source, so adjacency construction, Sparsify and COO edge extraction
    # (sparse_adjacency, edge_index_batch, edge_attr_batch, batch) are untranslated.
    return node_features, x_ebd_scaled, attn


# ---------------------------------------------------------------------------
# Pure-JAX references (conv-based, mirrors PyTorch Conv1d semantics)
# ---------------------------------------------------------------------------
def ref_region_embedder(x, params, cfg, compute_dtype=jnp.float32):
    cd = compute_dtype
    B, N, T, L = x.shape
    C = cfg.itcn_d
    h = (jnp.dot(x.reshape(-1, L).astype(cd), params["W_in"].astype(cd),
                 precision=_HI, preferred_element_type=jnp.float32)
         .reshape(B, N, T, C) + params["b_in"])
    y = jnp.transpose(h, (0, 1, 3, 2)).reshape(B * N, C, T)        # NCW
    for layer in range(cfg.n_itcn_layers):
        dil = 2 ** layer
        branches = []
        for i, K in enumerate(cfg.kernel_list):
            w, b = params["conv"][layer][i]                        # (K,C,C3), (1,C3)
            w_oik = jnp.transpose(w, (2, 1, 0)).astype(cd)
            p = (K - 1) * dil
            out = jax.lax.conv_general_dilated(
                y.astype(cd), w_oik, window_strides=(1,), padding=[(p, p)],
                rhs_dilation=(dil,), dimension_numbers=("NCH", "OIH", "NCH"),
                precision=_HI, preferred_element_type=jnp.float32)
            branches.append(out[:, :, :T] + b.reshape(1, -1, 1))
        y = jax.nn.relu(jnp.concatenate(branches, axis=1))
    y = y.reshape(B, N, C, T).transpose(0, 3, 1, 2)                # (B, T, N, C)
    h2 = jax.nn.relu(
        jnp.dot(y.reshape(-1, C).astype(cd), params["W1"].astype(cd),
                precision=_HI, preferred_element_type=jnp.float32)
        .reshape(B, T, N, C) + params["b1"])
    out = (jnp.dot(h2.reshape(-1, C).astype(cd), params["W2"].astype(cd),
                   precision=_HI, preferred_element_type=jnp.float32)
           .reshape(B, T, N, -1) + params["b2"])
    return out


def ref_spatial_attention(x_ebd, wa1, wa2):
    xs = jnp.mean(x_ebd, axis=-1)
    h = jax.nn.relu(jnp.einsum("btn,nk->btk", xs, wa1, precision=_HI))
    return jax.nn.sigmoid(jnp.einsum("btk,kn->btn", h, wa2, precision=_HI))[..., None]


# ---------------------------------------------------------------------------
# Main
# ---------------------------------------------------------------------------
if __name__ == "__main__":
    cfg = Cfg(len_window=16, itcn_d=24, ebd_d=8, kernel_list=(2, 3, 5),
              n_itcn_layers=2, n_neurons=4, t_repetition=8, tau=0.5)
    B = 2
    C, E, L = cfg.itcn_d, cfg.ebd_d, cfg.len_window
    C3 = C // 3
    Ne = int(cfg.tau * cfg.n_neurons)

    key = jax.random.PRNGKey(0)
    keys = iter(jax.random.split(key, 64))

    def init(shape, scale=0.1):
        return scale * jax.random.normal(next(keys), shape, jnp.float32)

    params = {
        "W_in": init((L, C)),
        "b_in": init((1, C)),
        "conv": [[(init((K, C, C3)), init((1, C3))) for K in cfg.kernel_list]
                 for _ in range(cfg.n_itcn_layers)],
        "W1": init((C, C)),
        "b1": init((1, C)),
        "W2": init((C, E)),
        "b2": init((1, E)),
        "Wa1": init((cfg.n_neurons, Ne)),
        "Wa2": init((Ne, cfg.n_neurons)),
    }

    x = jax.random.normal(
        next(keys), (B, cfg.n_neurons, cfg.t_repetition, cfg.len_window),
        jnp.float32)

    # --- f32 run (default block sizing: grid has >=2 steps); exact structural check
    nf32, scaled32, attn32 = dyg_learner_forward(
        x, params, cfg=cfg, compute_dtype=jnp.float32)
    nf32 = jax.block_until_ready(nf32)
    assert nf32.shape == (B, cfg.t_repetition, cfg.n_neurons, E), nf32.shape
    assert attn32.shape == (B, cfg.t_repetition, cfg.n_neurons, 1), attn32.shape
    assert scaled32.shape == nf32.shape, scaled32.shape

    ref32 = ref_region_embedder(x, params, cfg, jnp.float32)
    attn_ref = ref_spatial_attention(ref32, params["Wa1"], params["Wa2"])
    ok = True
    ok &= bool(jnp.allclose(nf32, ref32, atol=1e-3, rtol=1e-3))
    ok &= bool(jnp.allclose(attn32, attn_ref, atol=1e-3, rtol=1e-3))
    ok &= bool(jnp.allclose(scaled32, attn_ref * ref32, atol=1e-3, rtol=1e-3))

    # --- bf16 run (performance default) with sample padding (M % G != 0);
    #     check against a bf16-matched reference
    nfb, _, _ = dyg_learner_forward(
        x, params, cfg=cfg, samples_per_block=3, compute_dtype=jnp.bfloat16)
    nfb = jax.block_until_ready(nfb)
    refb = ref_region_embedder(x, params, cfg, jnp.bfloat16)
    ok &= bool(jnp.allclose(nfb, refb, atol=2e-3, rtol=2e-3))

    if ok:
        print("KERNEL_OK")
    else:
        print("MISMATCH",
              "f32:", float(jnp.max(jnp.abs(nf32 - ref32))),
              "bf16:", float(jnp.max(jnp.abs(nfb - refb))),
              "attn:", float(jnp.max(jnp.abs(attn32 - attn_ref))))
</pallas_src>

<mosaic_0001>
module attributes {stable_mosaic.version = 11 : i64} {
  func.func @kernel(%arg0: i32, %arg1: memref<32x16xf32, #tpu.memory_space<vmem>>, %arg2: memref<16x24xf32, #tpu.memory_space<vmem>>, %arg3: memref<1x24xf32, #tpu.memory_space<vmem>>, %arg4: memref<10x24x24xf32, #tpu.memory_space<vmem>>, %arg5: memref<2x1x24xf32, #tpu.memory_space<vmem>>, %arg6: memref<24x24xf32, #tpu.memory_space<vmem>>, %arg7: memref<1x24xf32, #tpu.memory_space<vmem>>, %arg8: memref<24x8xf32, #tpu.memory_space<vmem>>, %arg9: memref<1x8xf32, #tpu.memory_space<vmem>>, %arg10: memref<32x8xf32, #tpu.memory_space<vmem>>, %arg11: memref<40x24xf32, #tpu.memory_space<vmem>>) attributes {dimension_semantics = [#tpu.dimension_semantics<parallel>], iteration_bounds = array<i64: 2>, scalar_prefetch = 0 : i64, scratch_operands = 1 : i64, tpu.core_type = #tpu.core_type<tc>, window_params = [{transform_indices = @transform_0, window_bounds = array<i64: 32, 16>}, {pipeline_mode = #tpu.pipeline_mode<synchronous>, transform_indices = @transform_1, window_bounds = array<i64: 16, 24>}, {pipeline_mode = #tpu.pipeline_mode<synchronous>, transform_indices = @transform_2, window_bounds = array<i64: 1, 24>}, {pipeline_mode = #tpu.pipeline_mode<synchronous>, transform_indices = @transform_3, window_bounds = array<i64: 10, 24, 24>}, {pipeline_mode = #tpu.pipeline_mode<synchronous>, transform_indices = @transform_4, window_bounds = array<i64: 2, 1, 24>}, {pipeline_mode = #tpu.pipeline_mode<synchronous>, transform_indices = @transform_5, window_bounds = array<i64: 24, 24>}, {pipeline_mode = #tpu.pipeline_mode<synchronous>, transform_indices = @transform_6, window_bounds = array<i64: 1, 24>}, {pipeline_mode = #tpu.pipeline_mode<synchronous>, transform_indices = @transform_7, window_bounds = array<i64: 24, 8>}, {pipeline_mode = #tpu.pipeline_mode<synchronous>, transform_indices = @transform_8, window_bounds = array<i64: 1, 8>}, {transform_indices = @transform_9, window_bounds = array<i64: 32, 8>}]} {
    %c0_i32 = arith.constant 0 : i32
    %0 = arith.cmpi eq, %arg0, %c0_i32 : i32
    %1 = arith.extui %0 : i1 to i32
    %c0_i32_0 = arith.constant 0 : i32
    %2 = arith.cmpi ne, %1, %c0_i32_0 : i32
    scf.if %2 {
      %cst_89 = arith.constant 0.000000e+00 : f32
      %140 = vector.broadcast %cst_89 : f32 to vector<8x24xf32>
      %c0_90 = arith.constant 0 : index
      %c0_91 = arith.constant 0 : index
      %141 = vector.load %arg11[%c0_90, %c0_91] : memref<40x24xf32, #tpu.memory_space<vmem>>, vector<8x24xf32>
      tpu.vector_store %arg11[%c0_90, %c0_91], %140 {strides = array<i32>} : memref<40x24xf32, #tpu.memory_space<vmem>>, vector<8x24xf32>,
    } else {
    }
    %c0 = arith.constant 0 : index
    %c0_1 = arith.constant 0 : index
    %3 = vector.load %arg1[%c0, %c0_1] : memref<32x16xf32, #tpu.memory_space<vmem>>, vector<32x16xf32>
    %c0_2 = arith.constant 0 : index
    %c0_3 = arith.constant 0 : index
    %4 = vector.load %arg2[%c0_2, %c0_3] : memref<16x24xf32, #tpu.memory_space<vmem>>, vector<16x24xf32>
    %cst = arith.constant dense<0.000000e+00> : vector<32x24xf32>
    %5 = tpu.matmul %3, %4, %cst {dimension_numbers = #tpu.dot_dimension_numbers<[1], [0], [0], [1], [0, 0, 1, 1], [], []>} : vector<32x16xf32>, vector<16x24xf32>, vector<32x24xf32> -> vector<32x24xf32>
    %c0_4 = arith.constant 0 : index
    %c0_5 = arith.constant 0 : index
    %6 = vector.load %arg3[%c0_4, %c0_5] : memref<1x24xf32, #tpu.memory_space<vmem>>, vector<1x24xf32>
    %7 = vector.broadcast %6 : vector<1x24xf32> to vector<32x24xf32>
    %8 = arith.addf %5, %7 : vector<32x24xf32>
    %9 = tpu.iota {dimensions = array<i32: 0>} : vector<32x1xi32>
    %c8_i32 = arith.constant 8 : i32
    %c0_i32_6 = arith.constant 0 : i32
    %10 = arith.cmpi eq, %c8_i32, %c0_i32_6 : i32
    %c1_i32 = arith.constant 1 : i32
    %11 = arith.select %10, %c1_i32, %c8_i32 : i32
    %12 = vector.broadcast %11 : i32 to vector<32x1xi32>
    %13 = arith.remsi %9, %12 : vector<32x1xi32>
    %c0_i32_7 = arith.constant 0 : i32
    %14 = vector.broadcast %c0_i32_7 : i32 to vector<32x1xi32>
    %15 = arith.cmpi ne, %13, %14 : vector<32x1xi32>
    %c0_i32_8 = arith.constant 0 : i32
    %16 = vector.broadcast %c0_i32_8 : i32 to vector<32x1xi32>
    %17 = arith.cmpi slt, %13, %16 : vector<32x1xi32>
    %c0_i32_9 = arith.constant 0 : i32
    %18 = arith.cmpi slt, %11, %c0_i32_9 : i32
    %19 = vector.broadcast %18 : i1 to vector<32x1xi1>
    %20 = vector.broadcast %19 : vector<32x1xi1> to vector<32x1xi1>
    %21 = arith.xori %17, %20 : vector<32x1xi1>
    %22 = arith.andi %21, %15 : vector<32x1xi1>
    %23 = vector.broadcast %11 : i32 to vector<32x1xi32>
    %24 = arith.addi %13, %23 : vector<32x1xi32>
    %25 = arith.select %22, %24, %13 : vector<32x1xi1>, vector<32x1xi32>
    %c8 = arith.constant 8 : index
    %c0_10 = arith.constant 0 : index
    %26 = vector.load %arg11[%c8, %c0_10] : memref<40x24xf32, #tpu.memory_space<vmem>>, vector<32x24xf32>
    tpu.vector_store %arg11[%c8, %c0_10], %8 {strides = array<i32>} : memref<40x24xf32, #tpu.memory_space<vmem>>, vector<32x24xf32>,
    %cst_11 = arith.constant 0.000000e+00 : f32
    %27 = vector.broadcast %cst_11 : f32 to vector<32x24xf32>
    %c0_12 = arith.constant 0 : index
    %c0_13 = arith.constant 0 : index
    %c0_14 = arith.constant 0 : index
    %28 = vector.load %arg4[%c0_12, %c0_13, %c0_14] : memref<10x24x24xf32, #tpu.memory_space<vmem>>, vector<1x24x24xf32>
    %29 = vector.shape_cast %28 : vector<1x24x24xf32> to vector<24x24xf32>
    %cst_15 = arith.constant dense<0.000000e+00> : vector<32x24xf32>
    %30 = tpu.matmul %8, %29, %cst_15 {dimension_numbers = #tpu.dot_dimension_numbers<[1], [0], [0], [1], [0, 0, 1, 1], [], []>} : vector<32x24xf32>, vector<24x24xf32>, vector<32x24xf32> -> vector<32x24xf32>
    %31 = arith.addf %27, %30 : vector<32x24xf32>
    %c7 = arith.constant 7 : index
    %c0_16 = arith.constant 0 : index
    %32 = vector.load %arg11[%c7, %c0_16] : memref<40x24xf32, #tpu.memory_space<vmem>>, vector<32x24xf32>
    %c1_i32_17 = arith.constant 1 : i32
    %33 = vector.broadcast %c1_i32_17 : i32 to vector<32x1xi32>
    %34 = arith.cmpi sge, %25, %33 : vector<32x1xi32>
    %cst_18 = arith.constant 0.000000e+00 : f32
    %35 = vector.shape_cast %34 : vector<32x1xi1> to vector<32x1xi1>
    %36 = vector.broadcast %35 : vector<32x1xi1> to vector<32x24xi1>
    %37 = vector.broadcast %cst_18 : f32 to vector<32x24xf32>
    %38 = arith.select %36, %32, %37 : vector<32x24xi1>, vector<32x24xf32>
    %c1 = arith.constant 1 : index
    %c0_19 = arith.constant 0 : index
    %c0_20 = arith.constant 0 : index
    %39 = vector.load %arg4[%c1, %c0_19, %c0_20] : memref<10x24x24xf32, #tpu.memory_space<vmem>>, vector<1x24x24xf32>
    %40 = vector.shape_cast %39 : vector<1x24x24xf32> to vector<24x24xf32>
    %cst_21 = arith.constant dense<0.000000e+00> : vector<32x24xf32>
    %41 = tpu.matmul %38, %40, %cst_21 {dimension_numbers = #tpu.dot_dimension_numbers<[1], [0], [0], [1], [0, 0, 1, 1], [], []>} : vector<32x24xf32>, vector<24x24xf32>, vector<32x24xf32> -> vector<32x24xf32>
    %42 = arith.addf %31, %41 : vector<32x24xf32>
    %c6 = arith.constant 6 : index
    %c0_22 = arith.constant 0 : index
    %43 = vector.load %arg11[%c6, %c0_22] : memref<40x24xf32, #tpu.memory_space<vmem>>, vector<32x24xf32>
    %c2_i32 = arith.constant 2 : i32
    %44 = vector.broadcast %c2_i32 : i32 to vector<32x1xi32>
    %45 = arith.cmpi sge, %25, %44 : vector<32x1xi32>
    %cst_23 = arith.constant 0.000000e+00 : f32
    %46 = vector.shape_cast %45 : vector<32x1xi1> to vector<32x1xi1>
    %47 = vector.broadcast %46 : vector<32x1xi1> to vector<32x24xi1>
    %48 = vector.broadcast %cst_23 : f32 to vector<32x24xf32>
    %49 = arith.select %47, %43, %48 : vector<32x24xi1>, vector<32x24xf32>
    %c2 = arith.constant 2 : index
    %c0_24 = arith.constant 0 : index
    %c0_25 = arith.constant 0 : index
    %50 = vector.load %arg4[%c2, %c0_24, %c0_25] : memref<10x24x24xf32, #tpu.memory_space<vmem>>, vector<1x24x24xf32>
    %51 = vector.shape_cast %50 : vector<1x24x24xf32> to vector<24x24xf32>
    %cst_26 = arith.constant dense<0.000000e+00> : vector<32x24xf32>
    %52 = tpu.matmul %49, %51, %cst_26 {dimension_numbers = #tpu.dot_dimension_numbers<[1], [0], [0], [1], [0, 0, 1, 1], [], []>} : vector<32x24xf32>, vector<24x24xf32>, vector<32x24xf32> -> vector<32x24xf32>
    %53 = arith.addf %42, %52 : vector<32x24xf32>
    %c5 = arith.constant 5 : index
    %c0_27 = arith.constant 0 : index
    %54 = vector.load %arg11[%c5, %c0_27] : memref<40x24xf32, #tpu.memory_space<vmem>>, vector<32x24xf32>
    %c3_i32 = arith.constant 3 : i32
    %55 = vector.broadcast %c3_i32 : i32 to vector<32x1xi32>
    %56 = arith.cmpi sge, %25, %55 : vector<32x1xi32>
    %cst_28 = arith.constant 0.000000e+00 : f32
    %57 = vector.shape_cast %56 : vector<32x1xi1> to vector<32x1xi1>
    %58 = vector.broadcast %57 : vector<32x1xi1> to vector<32x24xi1>
    %59 = vector.broadcast %cst_28 : f32 to vector<32x24xf32>
    %60 = arith.select %58, %54, %59 : vector<32x24xi1>, vector<32x24xf32>
    %c3 = arith.constant 3 : index
    %c0_29 = arith.constant 0 : index
    %c0_30 = arith.constant 0 : index
    %61 = vector.load %arg4[%c3, %c0_29, %c0_30] : memref<10x24x24xf32, #tpu.memory_space<vmem>>, vector<1x24x24xf32>
    %62 = vector.shape_cast %61 : vector<1x24x24xf32> to vector<24x24xf32>
    %cst_31 = arith.constant dense<0.000000e+00> : vector<32x24xf32>
    %63 = tpu.matmul %60, %62, %cst_31 {dimension_numbers = #tpu.dot_dimension_numbers<[1], [0], [0], [1], [0, 0, 1, 1], [], []>} : vector<32x24xf32>, vector<24x24xf32>, vector<32x24xf32> -> vector<32x24xf32>
    %64 = arith.addf %53, %63 : vector<32x24xf32>
    %c4 = arith.constant 4 : index
    %c0_32 = arith.constant 0 : index
    %65 = vector.load %arg11[%c4, %c0_32] : memref<40x24xf32, #tpu.memory_space<vmem>>, vector<32x24xf32>
    %c4_i32 = arith.constant 4 : i32
    %66 = vector.broadcast %c4_i32 : i32 to vector<32x1xi32>
    %67 = arith.cmpi sge, %25, %66 : vector<32x1xi32>
    %cst_33 = arith.constant 0.000000e+00 : f32
    %68 = vector.shape_cast %67 : vector<32x1xi1> to vector<32x1xi1>
    %69 = vector.broadcast %68 : vector<32x1xi1> to vector<32x24xi1>
    %70 = vector.broadcast %cst_33 : f32 to vector<32x24xf32>
    %71 = arith.select %69, %65, %70 : vector<32x24xi1>, vector<32x24xf32>
    %c4_34 = arith.constant 4 : index
    %c0_35 = arith.constant 0 : index
    %c0_36 = arith.constant 0 : index
    %72 = vector.load %arg4[%c4_34, %c0_35, %c0_36] : memref<10x24x24xf32, #tpu.memory_space<vmem>>, vector<1x24x24xf32>
    %73 = vector.shape_cast %72 : vector<1x24x24xf32> to vector<24x24xf32>
    %cst_37 = arith.constant dense<0.000000e+00> : vector<32x24xf32>
    %74 = tpu.matmul %71, %73, %cst_37 {dimension_numbers = #tpu.dot_dimension_numbers<[1], [0], [0], [1], [0, 0, 1, 1], [], []>} : vector<32x24xf32>, vector<24x24xf32>, vector<32x24xf32> -> vector<32x24xf32>
    %75 = arith.addf %64, %74 : vector<32x24xf32>
    %c0_38 = arith.constant 0 : index
    %c0_39 = arith.constant 0 : index
    %c0_40 = arith.constant 0 : index
    %76 = vector.load %arg5[%c0_38, %c0_39, %c0_40] : memref<2x1x24xf32, #tpu.memory_space<vmem>>, vector<1x1x24xf32>
    %77 = vector.shape_cast %76 : vector<1x1x24xf32> to vector<1x24xf32>
    %78 = vector.broadcast %77 : vector<1x24xf32> to vector<32x24xf32>
    %79 = arith.addf %75, %78 : vector<32x24xf32>
    %cst_41 = arith.constant 0.000000e+00 : f32
    %80 = vector.broadcast %cst_41 : f32 to vector<32x24xf32>
    %81 = arith.maximumf %79, %80 : vector<32x24xf32>
    %c8_42 = arith.constant 8 : index
    %c0_43 = arith.constant 0 : index
    %82 = vector.load %arg11[%c8_42, %c0_43] : memref<40x24xf32, #tpu.memory_space<vmem>>, vector<32x24xf32>
    tpu.vector_store %arg11[%c8_42, %c0_43], %81 {strides = array<i32>} : memref<40x24xf32, #tpu.memory_space<vmem>>, vector<32x24xf32>,
    %cst_44 = arith.constant 0.000000e+00 : f32
    %83 = vector.broadcast %cst_44 : f32 to vector<32x24xf32>
    %c5_45 = arith.constant 5 : index
    %c0_46 = arith.constant 0 : index
    %c0_47 = arith.constant 0 : index
    %84 = vector.load %arg4[%c5_45, %c0_46, %c0_47] : memref<10x24x24xf32, #tpu.memory_space<vmem>>, vector<1x24x24xf32>
    %85 = vector.shape_cast %84 : vector<1x24x24xf32> to vector<24x24xf32>
    %cst_48 = arith.constant dense<0.000000e+00> : vector<32x24xf32>
    %86 = tpu.matmul %81, %85, %cst_48 {dimension_numbers = #tpu.dot_dimension_numbers<[1], [0], [0], [1], [0, 0, 1, 1], [], []>} : vector<32x24xf32>, vector<24x24xf32>, vector<32x24xf32> -> vector<32x24xf32>
    %87 = arith.addf %83, %86 : vector<32x24xf32>
    %c6_49 = arith.constant 6 : index
    %c0_50 = arith.constant 0 : index
    %88 = vector.load %arg11[%c6_49, %c0_50] : memref<40x24xf32, #tpu.memory_space<vmem>>, vector<32x24xf32>
    %c2_i32_51 = arith.constant 2 : i32
    %89 = vector.broadcast %c2_i32_51 : i32 to vector<32x1xi32>
    %90 = arith.cmpi sge, %25, %89 : vector<32x1xi32>
    %cst_52 = arith.constant 0.000000e+00 : f32
    %91 = vector.shape_cast %90 : vector<32x1xi1> to vector<32x1xi1>
    %92 = vector.broadcast %91 : vector<32x1xi1> to vector<32x24xi1>
    %93 = vector.broadcast %cst_52 : f32 to vector<32x24xf32>
    %94 = arith.select %92, %88, %93 : vector<32x24xi1>, vector<32x24xf32>
    %c6_53 = arith.constant 6 : index
    %c0_54 = arith.constant 0 : index
    %c0_55 = arith.constant 0 : index
    %95 = vector.load %arg4[%c6_53, %c0_54, %c0_55] : memref<10x24x24xf32, #tpu.memory_space<vmem>>, vector<1x24x24xf32>
    %96 = vector.shape_cast %95 : vector<1x24x24xf32> to vector<24x24xf32>
    %cst_56 = arith.constant dense<0.000000e+00> : vector<32x24xf32>
    %97 = tpu.matmul %94, %96, %cst_56 {dimension_numbers = #tpu.dot_dimension_numbers<[1], [0], [0], [1], [0, 0, 1, 1], [], []>} : vector<32x24xf32>, vector<24x24xf32>, vector<32x24xf32> -> vector<32x24xf32>
    %98 = arith.addf %87, %97 : vector<32x24xf32>
    %c4_57 = arith.constant 4 : index
    %c0_58 = arith.constant 0 : index
    %99 = vector.load %arg11[%c4_57, %c0_58] : memref<40x24xf32, #tpu.memory_space<vmem>>, vector<32x24xf32>
    %c4_i32_59 = arith.constant 4 : i32
    %100 = vector.broadcast %c4_i32_59 : i32 to vector<32x1xi32>
    %101 = arith.cmpi sge, %25, %100 : vector<32x1xi32>
    %cst_60 = arith.constant 0.000000e+00 : f32
    %102 = vector.shape_cast %101 : vector<32x1xi1> to vector<32x1xi1>
    %103 = vector.broadcast %102 : vector<32x1xi1> to vector<32x24xi1>
    %104 = vector.broadcast %cst_60 : f32 to vector<32x24xf32>
    %105 = arith.select %103, %99, %104 : vector<32x24xi1>, vector<32x24xf32>
    %c7_61 = arith.constant 7 : index
    %c0_62 = arith.constant 0 : index
    %c0_63 = arith.constant 0 : index
    %106 = vector.load %arg4[%c7_61, %c0_62, %c0_63] : memref<10x24x24xf32, #tpu.memory_space<vmem>>, vector<1x24x24xf32>
    %107 = vector.shape_cast %106 : vector<1x24x24xf32> to vector<24x24xf32>
    %cst_64 = arith.constant dense<0.000000e+00> : vector<32x24xf32>
    %108 = tpu.matmul %105, %107, %cst_64 {dimension_numbers = #tpu.dot_dimension_numbers<[1], [0], [0], [1], [0, 0, 1, 1], [], []>} : vector<32x24xf32>, vector<24x24xf32>, vector<32x24xf32> -> vector<32x24xf32>
    %109 = arith.addf %98, %108 : vector<32x24xf32>
    %c2_65 = arith.constant 2 : index
    %c0_66 = arith.constant 0 : index
    %110 = vector.load %arg11[%c2_65, %c0_66] : memref<40x24xf32, #tpu.memory_space<vmem>>, vector<32x24xf32>
    %c6_i32 = arith.constant 6 : i32
    %111 = vector.broadcast %c6_i32 : i32 to vector<32x1xi32>
    %112 = arith.cmpi sge, %25, %111 : vector<32x1xi32>
    %cst_67 = arith.constant 0.000000e+00 : f32
    %113 = vector.shape_cast %112 : vector<32x1xi1> to vector<32x1xi1>
    %114 = vector.broadcast %113 : vector<32x1xi1> to vector<32x24xi1>
    %115 = vector.broadcast %cst_67 : f32 to vector<32x24xf32>
    %116 = arith.select %114, %110, %115 : vector<32x24xi1>, vector<32x24xf32>
    %c8_68 = arith.constant 8 : index
    %c0_69 = arith.constant 0 : index
    %c0_70 = arith.constant 0 : index
    %117 = vector.load %arg4[%c8_68, %c0_69, %c0_70] : memref<10x24x24xf32, #tpu.memory_space<vmem>>, vector<1x24x24xf32>
    %118 = vector.shape_cast %117 : vector<1x24x24xf32> to vector<24x24xf32>
    %cst_71 = arith.constant dense<0.000000e+00> : vector<32x24xf32>
    %119 = tpu.matmul %116, %118, %cst_71 {dimension_numbers = #tpu.dot_dimension_numbers<[1], [0], [0], [1], [0, 0, 1, 1], [], []>} : vector<32x24xf32>, vector<24x24xf32>, vector<32x24xf32> -> vector<32x24xf32>
    %120 = arith.addf %109, %119 : vector<32x24xf32>
    %c1_72 = arith.constant 1 : index
    %c0_73 = arith.constant 0 : index
    %c0_74 = arith.constant 0 : index
    %121 = vector.load %arg5[%c1_72, %c0_73, %c0_74] : memref<2x1x24xf32, #tpu.memory_space<vmem>>, vector<1x1x24xf32>
    %122 = vector.shape_cast %121 : vector<1x1x24xf32> to vector<1x24xf32>
    %123 = vector.broadcast %122 : vector<1x24xf32> to vector<32x24xf32>
    %124 = arith.addf %120, %123 : vector<32x24xf32>
    %cst_75 = arith.constant 0.000000e+00 : f32
    %125 = vector.broadcast %cst_75 : f32 to vector<32x24xf32>
    %126 = arith.maximumf %124, %125 : vector<32x24xf32>
    %c0_76 = arith.constant 0 : index
    %c0_77 = arith.constant 0 : index
    %127 = vector.load %arg6[%c0_76, %c0_77] : memref<24x24xf32, #tpu.memory_space<vmem>>, vector<24x24xf32>
    %cst_78 = arith.constant dense<0.000000e+00> : vector<32x24xf32>
    %128 = tpu.matmul %126, %127, %cst_78 {dimension_numbers = #tpu.dot_dimension_numbers<[1], [0], [0], [1], [0, 0, 1, 1], [], []>} : vector<32x24xf32>, vector<24x24xf32>, vector<32x24xf32> -> vector<32x24xf32>
    %c0_79 = arith.constant 0 : index
    %c0_80 = arith.constant 0 : index
    %129 = vector.load %arg7[%c0_79, %c0_80] : memref<1x24xf32, #tpu.memory_space<vmem>>, vector<1x24xf32>
    %130 = vector.broadcast %129 : vector<1x24xf32> to vector<32x24xf32>
    %131 = arith.addf %128, %130 : vector<32x24xf32>
    %cst_81 = arith.constant 0.000000e+00 : f32
    %132 = vector.broadcast %cst_81 : f32 to vector<32x24xf32>
    %133 = arith.maximumf %131, %132 : vector<32x24xf32>
    %c0_82 = arith.constant 0 : index
    %c0_83 = arith.constant 0 : index
    %134 = vector.load %arg8[%c0_82, %c0_83] : memref<24x8xf32, #tpu.memory_space<vmem>>, vector<24x8xf32>
    %cst_84 = arith.constant dense<0.000000e+00> : vector<32x8xf32>
    %135 = tpu.matmul %133, %134, %cst_84 {dimension_numbers = #tpu.dot_dimension_numbers<[1], [0], [0], [1], [0, 0, 1, 1], [], []>} : vector<32x24xf32>, vector<24x8xf32>, vector<32x8xf32> -> vector<32x8xf32>
    %c0_85 = arith.constant 0 : index
    %c0_86 = arith.constant 0 : index
    %136 = vector.load %arg9[%c0_85, %c0_86] : memref<1x8xf32, #tpu.memory_space<vmem>>, vector<1x8xf32>
    %137 = vector.broadcast %136 : vector<1x8xf32> to vector<32x8xf32>
    %138 = arith.addf %135, %137 : vector<32x8xf32>
    %c0_87 = arith.constant 0 : index
    %c0_88 = arith.constant 0 : index
    %139 = vector.load %arg10[%c0_87, %c0_88] : memref<32x8xf32, #tpu.memory_space<vmem>>, vector<32x8xf32>
    tpu.vector_store %arg10[%c0_87, %c0_88], %138 {strides = array<i32>} : memref<32x8xf32, #tpu.memory_space<vmem>>, vector<32x8xf32>,
    return
  }
  func.func @transform_0(%arg0: i32) -> (i32, i32) {
    %c0_i32 = arith.constant 0 : i32
    %c0_i32_0 = arith.constant 0 : i32
    return %arg0, %c0_i32 : i32, i32
  }
  func.func @transform_1(%arg0: i32) -> (i32, i32) {
    %c0_i32 = arith.constant 0 : i32
    %c0_i32_0 = arith.constant 0 : i32
    %c0_i32_1 = arith.constant 0 : i32
    return %c0_i32, %c0_i32_0 : i32, i32
  }
  func.func @transform_2(%arg0: i32) -> (i32, i32) {
    %c0_i32 = arith.constant 0 : i32
    %c0_i32_0 = arith.constant 0 : i32
    %c0_i32_1 = arith.constant 0 : i32
    return %c0_i32, %c0_i32_0 : i32, i32
  }
  func.func @transform_3(%arg0: i32) -> (i32, i32, i32) {
    %c0_i32 = arith.constant 0 : i32
    %c0_i32_0 = arith.constant 0 : i32
    %c0_i32_1 = arith.constant 0 : i32
    %c0_i32_2 = arith.constant 0 : i32
    return %c0_i32, %c0_i32_0, %c0_i32_1 : i32, i32, i32
  }
  func.func @transform_4(%arg0: i32) -> (i32, i32, i32) {
    %c0_i32 = arith.constant 0 : i32
    %c0_i32_0 = arith.constant 0 : i32
    %c0_i32_1 = arith.constant 0 : i32
    %c0_i32_2 = arith.constant 0 : i32
    return %c0_i32, %c0_i32_0, %c0_i32_1 : i32, i32, i32
  }
  func.func @transform_5(%arg0: i32) -> (i32, i32) {
    %c0_i32 = arith.constant 0 : i32
    %c0_i32_0 = arith.constant 0 : i32
    %c0_i32_1 = arith.constant 0 : i32
    return %c0_i32, %c0_i32_0 : i32, i32
  }
  func.func @transform_6(%arg0: i32) -> (i32, i32) {
    %c0_i32 = arith.constant 0 : i32
    %c0_i32_0 = arith.constant 0 : i32
    %c0_i32_1 = arith.constant 0 : i32
    return %c0_i32, %c0_i32_0 : i32, i32
  }
  func.func @transform_7(%arg0: i32) -> (i32, i32) {
    %c0_i32 = arith.constant 0 : i32
    %c0_i32_0 = arith.constant 0 : i32
    %c0_i32_1 = arith.constant 0 : i32
    return %c0_i32, %c0_i32_0 : i32, i32
  }
  func.func @transform_8(%arg0: i32) -> (i32, i32) {
    %c0_i32 = arith.constant 0 : i32
    %c0_i32_0 = arith.constant 0 : i32
    %c0_i32_1 = arith.constant 0 : i32
    return %c0_i32, %c0_i32_0 : i32, i32
  }
  func.func @transform_9(%arg0: i32) -> (i32, i32) {
    %c0_i32 = arith.constant 0 : i32
    %c0_i32_0 = arith.constant 0 : i32
    return %arg0, %c0_i32 : i32, i32
  }
}

module attributes {stable_mosaic.version = 11 : i64} {
  func.func @_attn_scale_kernel(%arg0: i32, %arg1: memref<8x32xf32, #tpu.memory_space<vmem>>, %arg2: memref<32x4xf32, #tpu.memory_space<vmem>>, %arg3: memref<4x2xf32, #tpu.memory_space<vmem>>, %arg4: memref<2x4xf32, #tpu.memory_space<vmem>>, %arg5: memref<4x32xf32, #tpu.memory_space<vmem>>, %arg6: memref<8x4xf32, #tpu.memory_space<vmem>>, %arg7: memref<8x32xf32, #tpu.memory_space<vmem>>) attributes {dimension_semantics = [#tpu.dimension_semantics<parallel>], iteration_bounds = array<i64: 2>, scalar_prefetch = 0 : i64, scratch_operands = 0 : i64, tpu.core_type = #tpu.core_type<tc>, window_params = [{transform_indices = @transform_0, window_bounds = array<i64: 8, 32>}, {pipeline_mode = #tpu.pipeline_mode<synchronous>, transform_indices = @transform_1, window_bounds = array<i64: 32, 4>}, {pipeline_mode = #tpu.pipeline_mode<synchronous>, transform_indices = @transform_2, window_bounds = array<i64: 4, 2>}, {pipeline_mode = #tpu.pipeline_mode<synchronous>, transform_indices = @transform_3, window_bounds = array<i64: 2, 4>}, {pipeline_mode = #tpu.pipeline_mode<synchronous>, transform_indices = @transform_4, window_bounds = array<i64: 4, 32>}, {transform_indices = @transform_5, window_bounds = array<i64: 8, 4>}, {transform_indices = @transform_6, window_bounds = array<i64: 8, 32>}]} {
    %c0 = arith.constant 0 : index
    %c0_0 = arith.constant 0 : index
    %0 = vector.load %arg1[%c0, %c0_0] : memref<8x32xf32, #tpu.memory_space<vmem>>, vector<8x32xf32>
    %c0_1 = arith.constant 0 : index
    %c0_2 = arith.constant 0 : index
    %1 = vector.load %arg2[%c0_1, %c0_2] : memref<32x4xf32, #tpu.memory_space<vmem>>, vector<32x4xf32>
    %cst = arith.constant dense<0.000000e+00> : vector<8x4xf32>
    %2 = tpu.matmul %0, %1, %cst {dimension_numbers = #tpu.dot_dimension_numbers<[1], [0], [0], [1], [0, 0, 1, 1], [], []>} : vector<8x32xf32>, vector<32x4xf32>, vector<8x4xf32> -> vector<8x4xf32>
    %c0_3 = arith.constant 0 : index
    %c0_4 = arith.constant 0 : index
    %3 = vector.load %arg3[%c0_3, %c0_4] : memref<4x2xf32, #tpu.memory_space<vmem>>, vector<4x2xf32>
    %cst_5 = arith.constant dense<0.000000e+00> : vector<8x2xf32>
    %4 = tpu.matmul %2, %3, %cst_5 {dimension_numbers = #tpu.dot_dimension_numbers<[1], [0], [0], [1], [0, 0, 1, 1], [], []>} : vector<8x4xf32>, vector<4x2xf32>, vector<8x2xf32> -> vector<8x2xf32>
    %cst_6 = arith.constant 0.000000e+00 : f32
    %5 = vector.broadcast %cst_6 : f32 to vector<8x2xf32>
    %6 = arith.maximumf %4, %5 : vector<8x2xf32>
    %c0_7 = arith.constant 0 : index
    %c0_8 = arith.constant 0 : index
    %7 = vector.load %arg4[%c0_7, %c0_8] : memref<2x4xf32, #tpu.memory_space<vmem>>, vector<2x4xf32>
    %cst_9 = arith.constant dense<0.000000e+00> : vector<8x4xf32>
    %8 = tpu.matmul %6, %7, %cst_9 {dimension_numbers = #tpu.dot_dimension_numbers<[1], [0], [0], [1], [0, 0, 1, 1], [], []>} : vector<8x2xf32>, vector<2x4xf32>, vector<8x4xf32> -> vector<8x4xf32>
    %9 = arith.negf %8 : vector<8x4xf32>
    %10 = math.exp %9 : vector<8x4xf32>
    %cst_10 = arith.constant 1.000000e+00 : f32
    %11 = vector.broadcast %cst_10 : f32 to vector<8x4xf32>
    %12 = arith.addf %11, %10 : vector<8x4xf32>
    %13 = arith.divf %11, %12 : vector<8x4xf32>
    %c0_11 = arith.constant 0 : index
    %c0_12 = arith.constant 0 : index
    %14 = vector.load %arg6[%c0_11, %c0_12] : memref<8x4xf32, #tpu.memory_space<vmem>>, vector<8x4xf32>
    tpu.vector_store %arg6[%c0_11, %c0_12], %13 {strides = array<i32>} : memref<8x4xf32, #tpu.memory_space<vmem>>, vector<8x4xf32>,
    %c0_13 = arith.constant 0 : index
    %c0_14 = arith.constant 0 : index
    %15 = vector.load %arg5[%c0_13, %c0_14] : memref<4x32xf32, #tpu.memory_space<vmem>>, vector<4x32xf32>
    %cst_15 = arith.constant dense<0.000000e+00> : vector<8x32xf32>
    %16 = tpu.matmul %13, %15, %cst_15 {dimension_numbers = #tpu.dot_dimension_numbers<[1], [0], [0], [1], [0, 0, 1, 1], [], []>} : vector<8x4xf32>, vector<4x32xf32>, vector<8x32xf32> -> vector<8x32xf32>
    %17 = arith.mulf %0, %16 : vector<8x32xf32>
    %c0_16 = arith.constant 0 : index
    %c0_17 = arith.constant 0 : index
    %18 = vector.load %arg7[%c0_16, %c0_17] : memref<8x32xf32, #tpu.memory_space<vmem>>, vector<8x32xf32>
    tpu.vector_store %arg7[%c0_16, %c0_17], %17 {strides = array<i32>} : memref<8x32xf32, #tpu.memory_space<vmem>>, vector<8x32xf32>,
    return
  }
  func.func @transform_0(%arg0: i32) -> (i32, i32) {
    %c0_i32 = arith.constant 0 : i32
    %c0_i32_0 = arith.constant 0 : i32
    return %arg0, %c0_i32 : i32, i32
  }
  func.func @transform_1(%arg0: i32) -> (i32, i32) {
    %c0_i32 = arith.constant 0 : i32
    %c0_i32_0 = arith.constant 0 : i32
    %c0_i32_1 = arith.constant 0 : i32
    return %c0_i32, %c0_i32_0 : i32, i32
  }
  func.func @transform_2(%arg0: i32) -> (i32, i32) {
    %c0_i32 = arith.constant 0 : i32
    %c0_i32_0 = arith.constant 0 : i32
    %c0_i32_1 = arith.constant 0 : i32
    return %c0_i32, %c0_i32_0 : i32, i32
  }
  func.func @transform_3(%arg0: i32) -> (i32, i32) {
    %c0_i32 = arith.constant 0 : i32
    %c0_i32_0 = arith.constant 0 : i32
    %c0_i32_1 = arith.constant 0 : i32
    return %c0_i32, %c0_i32_0 : i32, i32
  }
  func.func @transform_4(%arg0: i32) -> (i32, i32) {
    %c0_i32 = arith.constant 0 : i32
    %c0_i32_0 = arith.constant 0 : i32
    %c0_i32_1 = arith.constant 0 : i32
    return %c0_i32, %c0_i32_0 : i32, i32
  }
  func.func @transform_5(%arg0: i32) -> (i32, i32) {
    %c0_i32 = arith.constant 0 : i32
    %c0_i32_0 = arith.constant 0 : i32
    return %arg0, %c0_i32 : i32, i32
  }
  func.func @transform_6(%arg0: i32) -> (i32, i32) {
    %c0_i32 = arith.constant 0 : i32
    %c0_i32_0 = arith.constant 0 : i32
    return %arg0, %c0_i32 : i32, i32
  }
}

</mosaic_0001>

<bundles_post_ra>
// kernel: dyg_learner_forward.3
= control target key start
LH: loop header
LB: loop body
LE: loop exit
PB: predicated region body
PF: predicated region fallthrough
CT: control target
= control target key end

     0   :  { %s788_s21 = smov 0   ;;  %s845_s0 = inlined_call_operand.vmem [shape: f32[16,32], index: 0, kind: input, shape index: {}]   ;;  %s846_s1 = inlined_call_operand.vmem [shape: f32[32,4], index: 1, kind: input, shape index: {}]   ;;  %s847_s2 = inlined_call_operand.vmem [shape: f32[4,2], index: 2, kind: input, shape index: {}]   ;;  %s848_s3 = inlined_call_operand.vmem [shape: f32[2,4], index: 3, kind: input, shape index: {}]   ;;  %s849_s4 = inlined_call_operand.vmem [shape: f32[4,32], index: 4, kind: input, shape index: {}]   ;;  %s850_s5 = inlined_call_operand.vmem [shape: f32[16,4], index: 5, kind: output, shape index: {0}]   ;;  %s851_s6 = inlined_call_operand.vmem [shape: f32[16,32], index: 6, kind: output, shape index: {1}]  }
   0x1 LB: > { %s666_s22 = sadd.s32 4294967295, %s748_s21   ;;  %p670_p0 = scmp.ge.s32.totalorder %s748_s21, 1  ;;  %s748_s21 = sphi %s788_s21, %s17_s21  }
   0x2   : > { %p214_p1 = scmp.lt.s32.totalorder %s748_s21, 3 }
   0x4   : > { %p215_p2 = pnand %p670_p0, %p214_p1 }
   0x5   : > { %v259_v0 = vld [vmem:[%s846_s1] sm:$0xff] (!%p215_p2)  ;;  %v260_v1 = vld [vmem:[%s846_s1 + $0x8] sm:$0xff] (!%p215_p2)  ;;  %v261_v2 = vld [vmem:[%s846_s1 + $0x10] sm:$0xff] (!%p215_p2)  ;;  %v750_v3 = vmov (!%p215_p2), 0.0|0.0   ;;  %vm751_vm0 = vmmov (!%p215_p2), 0   ;;  %v752_v6 = vmov (!%p215_p2), 0.0  }
   0x6   : > { %218 = sbr.rel (%p215_p2) target bundleno = 896 (0x380), region = 40  ;;  %721 = vmatprep.subr.bf16.mxu0 (!%p215_p2), %v750_v3  ;;  %v722_v4 = vpack.c.bf16 (!%p215_p2), %v260_v1, %v259_v0  ;;  %v262_v5 = vld [vmem:[%s846_s1 + $0x18] sm:$0xff] (!%p215_p2)  ;;  %703 = vmatprep.mubr.msk.f32.mxu0 (!%p215_p2), %vm751_vm0, %v752_v6  ;;  %p246_p3 = scmp.lt.s32.totalorder (!%p215_p2), %s666_s22, 1  ;;  %vm263_vm1 = vcmask (!%p215_p2), 261120   ;;  %v337_v9 = vld [vmem:[%s847_s2] sm:$0xf] (!%p215_p2) }
   0x7   : > { %706 = vmatprep.subr.mxu1 (!%p215_p2), %v752_v6  ;;  %708 = vmatprep.mubr.msk.f32.mxu1 (!%p215_p2), %vm751_vm0, %v752_v6  ;;  %v725_v7 = vpack.c.bf16 (!%p215_p2), %v262_v5, %v261_v2  ;;  %vm342_vm2 = vcmask (!%p215_p2), 1043456   ;;  %vm338_vm3 = vcmask (!%p215_p2), 31744   ;;  %v417_v10 = vld [vmem:[%s848_s3] sm:$0x3] (!%p215_p2)  ;;  %vm422_vm4 = vcmask (!%p215_p2), 1041408  }
   0x8   : > { %723 = vmatpush3.bf16.msra.mxu0 (!%p215_p2), %v722_v4  ;;  %707 = vmatpush3.msk.msra.mxu1 (!%p215_p2), %vm342_vm2, %v337_v9  ;;  %vm418_vm5 = vcmask (!%p215_p2), 15360   ;;  %v503_v16 = vld [vmem:[%s849_s4] sm:$0xf] (!%p215_p2) }
   0x9   : > { %724 = vmatprep.subr.bf16.mxu0 (!%p215_p2), %v750_v3  ;;  %711 = vmatprep.subr.mxu1 (!%p215_p2), %v752_v6 }
   0xc   : > { %726 = vmatpush3.bf16.msra.mxu0 (!%p215_p2), %v725_v7 }
   0xd   : > { %s853_s22 = smov (!%p246_p3, %s666_s22), 1 }
   0xe   : > { %s810_s7 = sshll.u32 %s853_s22, 3 }
   0xf   : > { %s249_s10 = scalar_lea.vmem %s845_s0, %s810_s7  ;;  %s253_s19 = scalar_lea.vmem %s850_s5, %s810_s7 }
  0x10   : > { %v258_v8 = vld [vmem:[%s249_s10] sm:$0xff]  ;;  %s257_s23 = scalar_lea.vmem %s851_s6, %s810_s7 }
  0x11   : > { %704 = vmatmul.mubr.msk.f32.vlgmr.msra.gmra.mrb[0].mxu0 %vm263_vm1, %v258_v8 }
  0xe4   : > { %v333_v11 = vpop.f32.mrb[0].mxu0 }
  0xe5   : > { %v705_v12 = vpop.f32.mrb[1].mxu0  ;;  %709 = vmatmul.mubr.msk.f32.vlgmr.msra.gmra.mrb[0].mxu1 %vm338_vm3, %v333_v11 }
  0xe6   : > { %712 = vmatpush3.msk.msra.mxu1 %vm422_vm4, %v417_v10  ;;  %713 = vmatprep.mubr.msk.f32.mxu1 %vm751_vm0, %v752_v6 }
  0xe7   : > { %716 = vmatprep.subr.mxu1 %v752_v6 }
 0x1b8   : > { %v412_v13 = vpop.f32.mrb[0].mxu1 }
 0x1b9   : > { %v416_v14 = vmax.f32 %v412_v13, 0.0  ;;  %v710_v15 = vpop.f32.mrb[1].mxu1 }
 0x1bb   : > { %714 = vmatmul.mubr.msk.f32.vlgmr.msra.gmra.mrb[2].mxu1 %vm418_vm5, %v416_v14 }
 0x1bc   : > { %718 = vmatprep.mubr.msk.f32.mxu1 %vm751_vm0, %v752_v6  ;;  %717 = vmatpush3.msk.msra.mxu1 %vm342_vm2, %v503_v16 }
 0x28e   : > { %v492_v17 = vpop.f32.mrb[2].mxu1 }
 0x28f   : > { %v679_v18 = vmul.f32 -1.442695, %v492_v17  ;;  %v715_v19 = vpop.f32.mrb[3].mxu1 }
 0x291   : > { %738 = vpow2.f32 %v679_v18 }
 0x29b   : > { %v739_v20 = vpop.eup %738 }
 0x29c   : > { %v499_v21 = vadd.f32 1.0, %v739_v20 }
 0x29e   : > { %740 = vrcp.f32 %v499_v21 }
 0x2a8   : > { %v741_v22 = vpop.eup %740 }
 0x2a9   : > { %502 = vst.msk [vmem:[%s253_s19] sm:$0xff] %vm338_vm3, %v741_v22  ;;  %719 = vmatmul.mubr.msk.f32.vlgmr.msra.gmra.mrb[4].mxu1 %vm338_vm3, %v741_v22 }
 0x37c   : > { %v576_v23 = vpop.f32.mrb[4].mxu1 }
 0x37d   : > { %v580_v24 = vmul.f32 %v576_v23, %v258_v8  ;;  %v720_v25 = vpop.f32.mrb[5].mxu1 }
 0x37f   : > { %581 = vst.msk [vmem:[%s257_s23] sm:$0xff] %vm263_vm1, %v580_v24 }
 0x380 PF: > { %s17_s21 = sadd.s32 1, %s748_s21  }
 0x381   : > { %p14_p4 = scmp.ge.s32.totalorder %s17_s21, 4  }
 0x383   :  { %16 = sbr.rel (!%p14_p4) target bundleno = 1 (0x1), region = 82 }

// kernel: dyg_learner_forward.2
= control target key start
LH: loop header
LB: loop body
LE: loop exit
PB: predicated region body
PF: predicated region fallthrough
CT: control target
= control target key end

     0   :  { %s2328_s30 = smov 0   ;;  %s2583_s0 = inlined_call_operand.vmem [shape: f32[64,16], index: 0, kind: input, shape index: {}]   ;;  %s2584_s1 = inlined_call_operand.vmem [shape: f32[16,24], index: 1, kind: input, shape index: {}]   ;;  %s2585_s2 = inlined_call_operand.vmem [shape: f32[1,24], index: 2, kind: input, shape index: {}]   ;;  %s2586_s3 = inlined_call_operand.vmem [shape: f32[10,24,24], index: 3, kind: input, shape index: {}]   ;;  %s2587_s4 = inlined_call_operand.vmem [shape: f32[2,1,24], index: 4, kind: input, shape index: {}]   ;;  %s2588_s5 = inlined_call_operand.vmem [shape: f32[24,24], index: 5, kind: input, shape index: {}]   ;;  %s2589_s6 = inlined_call_operand.vmem [shape: f32[1,24], index: 6, kind: input, shape index: {}]   ;;  %s2590_s7 = inlined_call_operand.vmem [shape: f32[24,8], index: 7, kind: input, shape index: {}]   ;;  %s2591_s8 = inlined_call_operand.vmem [shape: f32[1,8], index: 8, kind: input, shape index: {}]   ;;  %s2592_s9 = inlined_call_operand.vmem [shape: f32[64,8], index: 9, kind: output, shape index: {}]  }
   0x1 LB: > { %s1869_s10 = sadd.s32 4294967295, %s2275_s30   ;;  %p1873_p0 = scmp.ge.s32.totalorder %s2275_s30, 1  ;;  %s2275_s30 = sphi %s2328_s30, %s19_s30  }
   0x2   : > { %p288_p1 = scmp.lt.s32.totalorder %s2275_s30, 3 }
   0x4   : > { %p289_p2 = pnand %p1873_p0, %p288_p1 }
   0x5   : > { %s1874_s11 = sshll.u32 (!%p289_p2), %s1869_s10, 2  ;;  %p1878_p4 = scmp.ne.s32.totalorder (!%p289_p2), %s1869_s10, 0 }
   0x6   : > { %292 = sbr.rel (%p289_p2) target bundleno = 1191 (0x4a7), region = 56  ;;  %p325_p3 = scmp.lt.s32.totalorder (!%p289_p2), %s1874_s11, 7 }
   0xd   : > { %s2594_s11 = smov (!%p325_p3, %s1874_s11), 7  ;;  %339 = sbr.rel (%p1878_p4) target bundleno = 20 (0x14), region = 60 }
   0xe   : > { %s1875_s12 = sshll.u32 %s2594_s11, 3  ;;  %vm340_vm0 = vcmask (!%p1878_p4), 195584   ;;  %v2277_v0 = vmov (!%p1878_p4), 0.0  }
   0xf   : > { %s328_s15 = scalar_lea.vmem %s2583_s0, %s1875_s12  ;;  %s2342_s18 = scalar_lea.vmem %s2592_s9, %s1875_s12  ;;  %341 = vst.msk [vmem:[#allocation2] sm:$0xff] (!%p1878_p4), %vm340_vm0, %v2277_v0 }
  0x14 PF: > { %v346_v1 = vld [vmem:[%s2584_s1] sm:$0xff]  ;;  %v347_v2 = vld [vmem:[%s2584_s1 + $0x8] sm:$0xff]  ;;  %vm355_vm1 = vcmask 130048   ;;  %v344_v6 = vld [vmem:[%s328_s15 + $0x10] sm:$0xff]  ;;  %v453_v15 = vlaneseq  ;;  %vm506_vm2 = vcmask 195584  }
  0x15   : > { %v342_v3 = vld [vmem:[%s328_s15] sm:$0xff]  ;;  %v2184_v4 = vpack.c.bf16 %v347_v2, %v346_v1  ;;  %v343_v5 = vld [vmem:[%s328_s15 + $0x8] sm:$0xff]  ;;  %v345_v7 = vld [vmem:[%s328_s15 + $0x18] sm:$0xff] }
  0x16   : > { %2046 = vmatprep.mubr.msk.f32.mxu0 %vm355_vm1, %v342_v3  ;;  %v1884_v8 = vld [vmem:[%s2586_s3 + $0x18] sm:$0xff]  ;;  %v1885_v9 = vld [vmem:[%s2586_s3 + $0x20] sm:$0xff]  ;;  %v1886_v11 = vld [vmem:[%s2586_s3 + $0x28] sm:$0xff]  ;;  %v454_v16 = vshrl.u32 %v453_v15, 7 }
  0x17   : > { %2185 = vmatprep.subr.bf16.mxu0 %v2184_v4  ;;  %v2188_v10 = vpack.c.bf16 %v1885_v9, %v1884_v8  ;;  %v511_v12 = vld [vmem:[%s2586_s3] sm:$0xff]  ;;  %v512_v13 = vld [vmem:[%s2586_s3 + $0x8] sm:$0xff]  ;;  %v513_v37 = vld [vmem:[%s2586_s3 + $0x10] sm:$0xff] }
  0x18   : > { %2187 = vmatpush3.bf16.msra.mxu0 %v2184_v4  ;;  %v2192_v14 = vpack.c.bf16 %v512_v13, %v511_v12  ;;  %v1879_v17 = vld [vmem:[%s2585_s2] ss:$0 sm:$0xff]  ;;  %v455_v21 = vadd.s32 8, %v454_v16  ;;  %v2370_v24 = vand.u32 7, %v454_v16  ;;  %v456_v28 = vadd.s32 16, %v454_v16  ;;  %v1895_v38 = vld [vmem:[%s2586_s3 + $0x30] sm:$0xff] }
  0x19   : > { %2189 = vmatprep.subr.bf16.mxu1 %v2188_v10  ;;  %v457_v29 = vadd.s32 24, %v454_v16  ;;  %v1896_v39 = vld [vmem:[%s2586_s3 + $0x38] sm:$0xff]  ;;  %v1897_v45 = vld [vmem:[%s2586_s3 + $0x40] sm:$0xff]  ;;  %v1902_v46 = vld [vmem:[%s2586_s3 + $0x48] sm:$0xff] }
  0x1a   : > { %2191 = vmatpush3.bf16.msra.mxu1 %v2188_v10  ;;  %v2372_v27 = vand.u32 7, %v455_v21  ;;  %vm518_vm3 = vcmp.ge.s32.totalorder %v2370_v24, 1  ;;  %v2378_v31 = vand.u32 7, %v456_v28  ;;  %v2196_v44 = vpack.c.bf16 %v1896_v39, %v1895_v38  ;;  %v1903_v47 = vld [vmem:[%s2586_s3 + $0x50] sm:$0xff]  ;;  %v1904_v54 = vld [vmem:[%s2586_s3 + $0x58] sm:$0xff]  ;;  %v1909_v55 = vld [vmem:[%s2586_s3 + $0x60] sm:$0xff] }
  0x1b   : > { %2047 = vmatmul.mubr.msk.f32.vlgmr.msra.gmra.mrb[0].mxu0 %vm355_vm1, %v343_v5  ;;  %2056 = vmatprep.subr.mxu1 %v1886_v11  ;;  %v2380_v32 = vand.u32 7, %v457_v29  ;;  %vm736_vm7 = vcmp.ge.s32.totalorder %v2370_v24, 2  ;;  %v2200_v49 = vpack.c.bf16 %v1903_v47, %v1902_v46  ;;  %v1910_v56 = vld [vmem:[%s2586_s3 + $0x68] sm:$0xff]  ;;  %vm861_vm11 = vcmp.ge.s32.totalorder %v2370_v24, 3  ;;  %v1911_v2 = vld [vmem:[%s2586_s3 + $0x70] sm:$0xff]  ;;  %v1921_v15 = vld [vmem:[%s2586_s3 + $0x98] sm:$0xff] }
  0x1c   : > { %2049 = vmatprep.mubr.msk.f32.mxu0 %vm355_vm1, %v344_v6  ;;  %vm519_vm4 = vcmp.ge.s32.totalorder %v2372_v27, 1  ;;  %vm520_vm5 = vcmp.ge.s32.totalorder %v2378_v31, 1  ;;  %vm737_vm8 = vcmp.ge.s32.totalorder %v2372_v27, 2  ;;  %vm738_vm9 = vcmp.ge.s32.totalorder %v2378_v31, 2  ;;  %v1916_v21 = vld [vmem:[%s2587_s4] ss:$0 sm:$0xff] }
  0x1d   : > { %vm521_vm6 = vcmp.ge.s32.totalorder %v2380_v32, 1  ;;  %vm739_vm10 = vcmp.ge.s32.totalorder %v2380_v32, 2  ;;  %v2204_v60 = vpack.c.bf16 %v1910_v56, %v1909_v55  ;;  %vm862_vm12 = vcmp.ge.s32.totalorder %v2372_v27, 3 }
  0x1e   : > { %2057 = vmatpush3.msra.mxu1 %v1886_v11  ;;  %vm863_vm13 = vcmp.ge.s32.totalorder %v2378_v31, 3  ;;  %vm864_vm14 = vcmp.ge.s32.totalorder %v2380_v32, 3  ;;  %vm986_vm15 = vcmp.ge.s32.totalorder %v2370_v24, 4  ;;  %vm987_vm0 = vcmp.ge.s32.totalorder %v2372_v27, 4 }
  0x1f   : > { %2050 = vmatmul.mubr.msk.f32.gmra.mrb[2].mxu0 %vm355_vm1, %v345_v7  ;;  %2193 = vmatprep.subr.bf16.mxu1 %v2192_v14  ;;  %vm988_vm1 = vcmp.ge.s32.totalorder %v2378_v31, 4 }
  0xee   : > { %v2048_v18 = vpop.f32.mrb[0].mxu0 }
  0xef   : > { %v440_v19 = vadd.f32 %v2048_v18, %v1879_v17  ;;  %v434_v20 = vpop.f32.mrb[1].mxu0  ;;  %v1917_v18 = vld [vmem:[%s2586_s3 + $0x78] sm:$0xff] }
  0xf0   : > { %v435_v22 = vadd.f32 %v1879_v17, %v434_v20 }
  0xf1   : > { %508 = vst.msk [vmem:[#allocation2 + $0x10] sm:$0xff] %vm506_vm2, %v440_v19 }
  0xf2   : > { %507 = vst.msk [vmem:[#allocation2 + $0x8] sm:$0xff] %vm506_vm2, %v435_v22  ;;  %v2051_v23 = vpop.f32.mrb[2].mxu0 }
  0xf3   : > { %v450_v25 = vadd.f32 %v2051_v23, %v1879_v17  ;;  %v444_v26 = vpop.f32.mrb[3].mxu0 }
  0xf4   : > { %v445_v30 = vadd.f32 %v1879_v17, %v444_v26  ;;  %v1922_v17 = vld [vmem:[%s2586_s3 + $0xa0] sm:$0xff] }
  0xf5   : > { %510 = vst.msk [vmem:[#allocation2 + $0x20] sm:$0xff] %vm506_vm2, %v450_v25 }
  0xf6   : > { %509 = vst.msk [vmem:[#allocation2 + $0x18] sm:$0xff] %vm506_vm2, %v445_v30 }
  0xf9   : > { %v514_v33 = vld [vmem:[#allocation2 + $0x7] sm:$0xff]  ;;  %v515_v34 = vld [vmem:[#allocation2 + $0xf] sm:$0xff] }
  0xfa   : > { %v530_v35 = vsel %vm518_vm3, %v514_v33, 0.0  ;;  %v531_v36 = vsel %vm519_vm4, %v515_v34, 0.0  ;;  %v732_v48 = vld [vmem:[#allocation2 + $0x6] sm:$0xff]  ;;  %v733_v51 = vld [vmem:[#allocation2 + $0xe] sm:$0xff]  ;;  %vm989_vm3 = vcmp.ge.s32.totalorder %v2380_v32, 4  ;;  %vm1453_vm4 = vcmp.ge.s32.totalorder %v2370_v24, 6 }
  0xfb   : > { %2058 = vmatprep.mubr.msk.f32.mxu1 %vm506_vm2, %v530_v35  ;;  %v748_v50 = vsel %vm736_vm7, %v732_v48, 0.0  ;;  %v749_v53 = vsel %vm737_vm8, %v733_v51, 0.0  ;;  %v857_v59 = vld [vmem:[#allocation2 + $0x5] sm:$0xff]  ;;  %v858_v63 = vld [vmem:[#allocation2 + $0xd] sm:$0xff] }
  0xfc   : > { %2059 = vmatmul.mubr.msk.f32.vlgmr.msra.gmra.mrb[0].mxu1 %vm506_vm2, %v531_v36  ;;  %v873_v62 = vsel %vm861_vm11, %v857_v59, 0.0  ;;  %v874_v1 = vsel %vm862_vm12, %v858_v63, 0.0  ;;  %v982_v5 = vld [vmem:[#allocation2 + $0x4] sm:$0xff]  ;;  %v983_v8 = vld [vmem:[#allocation2 + $0xc] sm:$0xff] }
  0xfd   : > { %2195 = vmatpush3.bf16.msra.mxu1 %v2192_v14  ;;  %v516_v40 = vld [vmem:[#allocation2 + $0x17] sm:$0xff]  ;;  %v517_v41 = vld [vmem:[#allocation2 + $0x1f] sm:$0xff]  ;;  %v998_v7 = vsel %vm986_vm15, %v982_v5, 0.0  ;;  %v999_v10 = vsel %vm987_vm0, %v983_v8, 0.0 }
  0xfe   : > { %v532_v42 = vsel %vm520_vm5, %v516_v40, 0.0  ;;  %2068 = vmatprep.subr.mxu1 %v513_v37  ;;  %v533_v43 = vsel %vm521_vm6, %v517_v41, 0.0  ;;  %v734_v52 = vld [vmem:[#allocation2 + $0x16] sm:$0xff]  ;;  %v735_v58 = vld [vmem:[#allocation2 + $0x1e] sm:$0xff]  ;;  %vm1454_vm5 = vcmp.ge.s32.totalorder %v2372_v27, 6  ;;  %vm1455_vm6 = vcmp.ge.s32.totalorder %v2378_v31, 6 }
  0xff   : > { %2061 = vmatprep.mubr.msk.f32.mxu1 %vm506_vm2, %v532_v42  ;;  %v750_v57 = vsel %vm738_vm9, %v734_v52, 0.0  ;;  %v751_v61 = vsel %vm739_vm10, %v735_v58, 0.0  ;;  %v859_v0 = vld [vmem:[#allocation2 + $0x15] sm:$0xff]  ;;  %v860_v4 = vld [vmem:[#allocation2 + $0x1d] sm:$0xff]  ;;  %v1919_v42 = vld [vmem:[%s2586_s3 + $0x88] sm:$0xff] }
 0x100   : > { %2062 = vmatmul.mubr.msk.f32.gmra.mrb[2].mxu1 %vm506_vm2, %v533_v43  ;;  %v875_v3 = vsel %vm863_vm13, %v859_v0, 0.0  ;;  %v876_v6 = vsel %vm864_vm14, %v860_v4, 0.0  ;;  %v984_v9 = vld [vmem:[#allocation2 + $0x14] sm:$0xff]  ;;  %v985_v12 = vld [vmem:[#allocation2 + $0x1c] sm:$0xff]  ;;  %v1931_v43 = vld [vmem:[%s2586_s3 + $0xa8] sm:$0xff] }
 0x101   : > { %2069 = vmatpush3.msra.mxu1 %v513_v37  ;;  %2070 = vmatprep.mubr.msk.f32.mxu1 %vm506_vm2, %v435_v22  ;;  %v1000_v11 = vsel %vm988_vm1, %v984_v9, 0.0  ;;  %v1001_v13 = vsel %vm989_vm3, %v985_v12, 0.0  ;;  %v1920_v14 = vld [vmem:[%s2586_s3 + $0x90] sm:$0xff]  ;;  %v1938_v51 = vld [vmem:[%s2586_s3 + $0xc0] sm:$0xff]  ;;  %v1939_v52 = vld [vmem:[%s2586_s3 + $0xc8] sm:$0xff] }
 0x102   : > { %2197 = vmatprep.subr.bf16.mxu1 %v2196_v44  ;;  %v2208_v16 = vpack.c.bf16 %v1921_v15, %v1920_v14  ;;  %v1940_v59 = vld [vmem:[%s2586_s3 + $0xd0] sm:$0xff]  ;;  %v1701_v31 = vld [vmem:[%s2590_s7] sm:$0xff] }
 0x103   : > { %v1592_v27 = vld [vmem:[%s2588_s5 + $0x10] sm:$0xff] }
 0x104   : > { %2071 = vmatmul.mubr.msk.f32.vlgmr.msra.gmra.mrb[0].mxu1 %vm506_vm2, %v440_v19  ;;  %2209 = vmatprep.subr.bf16.mxu0 %v2208_v16  ;;  %v1918_v19 = vld [vmem:[%s2586_s3 + $0x80] sm:$0xff] }
 0x105   : > { %2199 = vmatpush3.bf16.msra.mxu1 %v2196_v44  ;;  %2073 = vmatprep.mubr.msk.f32.mxu1 %vm506_vm2, %v445_v30  ;;  %v2212_v20 = vpack.c.bf16 %v1918_v19, %v1917_v18  ;;  %v1932_v44 = vld [vmem:[%s2586_s3 + $0xb0] sm:$0xff] }
 0x106   : > { %2080 = vmatprep.subr.mxu1 %v1897_v45  ;;  %2211 = vmatpush3.bf16.msra.mxu0 %v2208_v16 }
 0x107   : > { %2116 = vmatprep.subr.mxu0 %v1922_v17 }
 0x108   : > { %2074 = vmatmul.mubr.msk.f32.gmra.mrb[2].mxu1 %vm506_vm2, %v450_v25 }
 0x109   : > { %2081 = vmatpush3.msra.mxu1 %v1897_v45  ;;  %2082 = vmatprep.mubr.msk.f32.mxu1 %vm506_vm2, %v748_v50  ;;  %v1933_v50 = vld [vmem:[%s2586_s3 + $0xb8] sm:$0xff] }
 0x10a   : > { %2201 = vmatprep.subr.bf16.mxu1 %v2200_v49  ;;  %2117 = vmatpush3.msra.mxu0 %v1922_v17 }
 0x10b   : > { %2213 = vmatprep.subr.bf16.mxu0 %v2212_v20 }
 0x10c   : > { %2083 = vmatmul.mubr.msk.f32.vlgmr.msra.gmra.mrb[0].mxu1 %vm506_vm2, %v749_v53 }
 0x10d   : > { %2203 = vmatpush3.bf16.msra.mxu1 %v2200_v49  ;;  %2085 = vmatprep.mubr.msk.f32.mxu1 %vm506_vm2, %v750_v57  ;;  %v2216_v49 = vpack.c.bf16 %v1932_v44, %v1931_v43 }
 0x10e   : > { %2092 = vmatprep.subr.mxu1 %v1904_v54 }
 0x110   : > { %2086 = vmatmul.mubr.msk.f32.gmra.mrb[2].mxu1 %vm506_vm2, %v751_v61  ;;  %v1591_v61 = vld [vmem:[%s2588_s5 + $0x8] sm:$0xff] }
 0x111   : > { %2093 = vmatpush3.msra.mxu1 %v1904_v54  ;;  %2094 = vmatprep.mubr.msk.f32.mxu1 %vm506_vm2, %v873_v62  ;;  %v2220_v54 = vpack.c.bf16 %v1939_v52, %v1938_v51 }
 0x112   : > { %2205 = vmatprep.subr.bf16.mxu1 %v2204_v60 }
 0x114   : > { %2095 = vmatmul.mubr.msk.f32.vlgmr.msra.gmra.mrb[0].mxu1 %vm506_vm2, %v874_v1 }
 0x115   : > { %2207 = vmatpush3.bf16.msra.mxu1 %v2204_v60  ;;  %2097 = vmatprep.mubr.msk.f32.mxu1 %vm506_vm2, %v875_v3  ;;  %v1590_v60 = vld [vmem:[%s2588_s5] sm:$0xff] }
 0x116   : > { %2104 = vmatprep.subr.mxu1 %v1911_v2  ;;  %v2224_v1 = vpack.c.bf16 %v1591_v61, %v1590_v60 }
 0x118   : > { %2098 = vmatmul.mubr.msk.f32.gmra.mrb[2].mxu1 %vm506_vm2, %v876_v6 }
 0x119   : > { %2105 = vmatpush3.msra.mxu1 %v1911_v2  ;;  %2106 = vmatprep.mubr.msk.f32.mxu1 %vm506_vm2, %v998_v7 }
 0x11c   : > { %2107 = vmatmul.mubr.msk.f32.vlgmr.msra.gmra.mrb[0].mxu1 %vm506_vm2, %v999_v10  ;;  %v1946_v10 = vld [vmem:[%s2587_s4 + $0x1] ss:$0 sm:$0xff] }
 0x11d   : > { %2109 = vmatprep.mubr.msk.f32.mxu1 %vm506_vm2, %v1000_v11 }
 0x120   : > { %2110 = vmatmul.mubr.msk.f32.gmra.mrb[2].mxu1 %vm506_vm2, %v1001_v13 }
 0x1ef   : > { %v2108_v22 = vpop.f32.mrb[0].mxu1 }
 0x1f0   : > { %v1115_v23 = vadd.f32 %v2108_v22, %v1916_v21  ;;  %v1084_v25 = vpop.f32.mrb[1].mxu1 }
 0x1f1   : > { %v1114_v26 = vadd.f32 %v1916_v21, %v1084_v25  ;;  %v1947_v25 = vld [vmem:[%s2589_s6] ss:$0 sm:$0xff] }
 0x1f2   : > { %v1119_v28 = vmax.f32 %v1115_v23, 0.0  ;;  %v1703_v23 = vld [vmem:[%s2590_s7 + $0x10] sm:$0xff] }
 0x1f3   : > { %v1118_v29 = vmax.f32 %v1114_v26, 0.0  ;;  %v2111_v30 = vpop.f32.mrb[2].mxu1 }
 0x1f4   : > { %1123 = vst.msk [vmem:[#allocation2 + $0x10] sm:$0xff] %vm506_vm2, %v1119_v28  ;;  %v1117_v33 = vadd.f32 %v2111_v30, %v1916_v21  ;;  %v1094_v34 = vpop.f32.mrb[3].mxu1 }
 0x1f5   : > { %1122 = vst.msk [vmem:[#allocation2 + $0x8] sm:$0xff] %vm506_vm2, %v1118_v29  ;;  %v1116_v35 = vadd.f32 %v1916_v21, %v1094_v34 }
 0x1f6   : > { %v1121_v36 = vmax.f32 %v1117_v33, 0.0 }
 0x1f7   : > { %v1120_v37 = vmax.f32 %v1116_v35, 0.0 }
 0x1f8   : > { %1125 = vst.msk [vmem:[#allocation2 + $0x20] sm:$0xff] %vm506_vm2, %v1121_v36 }
 0x1f9   : > { %1124 = vst.msk [vmem:[#allocation2 + $0x18] sm:$0xff] %vm506_vm2, %v1120_v37 }
 0x1fc   : > { %v1130_v38 = vld [vmem:[#allocation2 + $0x6] sm:$0xff]  ;;  %v1131_v39 = vld [vmem:[#allocation2 + $0xe] sm:$0xff] }
 0x1fd   : > { %v1134_v40 = vsel %vm736_vm7, %v1130_v38, 0.0  ;;  %v1135_v41 = vsel %vm737_vm8, %v1131_v39, 0.0  ;;  %v1336_v53 = vld [vmem:[#allocation2 + $0x4] sm:$0xff]  ;;  %v1337_v56 = vld [vmem:[#allocation2 + $0xc] sm:$0xff]  ;;  %vm1456_vm7 = vcmp.ge.s32.totalorder %v2380_v32, 6  ;;  %vm1808_vm8 = vcmask 64512  }
 0x1fe   : > { %2118 = vmatprep.mubr.msk.f32.mxu0 %vm506_vm2, %v1134_v40  ;;  %v1340_v55 = vsel %vm986_vm15, %v1336_v53, 0.0  ;;  %v1341_v58 = vsel %vm987_vm0, %v1337_v56, 0.0  ;;  %v1449_v0 = vld [vmem:[#allocation2 + $0x2] sm:$0xff]  ;;  %v1450_v4 = vld [vmem:[#allocation2 + $0xa] sm:$0xff] }
 0x1ff   : > { %2119 = vmatmul.mubr.msk.f32.vlgmr.msra.gmra.mrb[4].mxu0 %vm506_vm2, %v1135_v41  ;;  %v1465_v3 = vsel %vm1453_vm4, %v1449_v0, 0.0  ;;  %v1466_v6 = vsel %vm1454_vm5, %v1450_v4, 0.0  ;;  %v1702_v32 = vld [vmem:[%s2590_s7 + $0x8] sm:$0xff]  ;;  %v1952_v41 = vld [vmem:[%s2591_s8] ss:$0 sm:$0xff] }
 0x200   : > { %2215 = vmatpush3.bf16.msra.mxu0 %v2212_v20  ;;  %v1132_v45 = vld [vmem:[#allocation2 + $0x16] sm:$0xff]  ;;  %v1133_v46 = vld [vmem:[#allocation2 + $0x1e] sm:$0xff]  ;;  %v2228_v9 = vpack.c.bf16 %v1702_v32, %v1701_v31 }
 0x201   : > { %v1136_v47 = vsel %vm738_vm9, %v1132_v45, 0.0  ;;  %2128 = vmatprep.subr.mxu0 %v1919_v42  ;;  %v1137_v48 = vsel %vm739_vm10, %v1133_v46, 0.0  ;;  %v1338_v57 = vld [vmem:[#allocation2 + $0x14] sm:$0xff]  ;;  %v1339_v63 = vld [vmem:[#allocation2 + $0x1c] sm:$0xff] }
 0x202   : > { %2121 = vmatprep.mubr.msk.f32.mxu0 %vm506_vm2, %v1136_v47  ;;  %v1342_v62 = vsel %vm988_vm1, %v1338_v57, 0.0  ;;  %v1343_v2 = vsel %vm989_vm3, %v1339_v63, 0.0  ;;  %v1451_v5 = vld [vmem:[#allocation2 + $0x12] sm:$0xff]  ;;  %v1452_v7 = vld [vmem:[#allocation2 + $0x1a] sm:$0xff]  ;;  %2229 = vmatprep.subr.bf16.mxu1 %v2228_v9 }
 0x203   : > { %2122 = vmatmul.mubr.msk.f32.gmra.mrb[6].mxu0 %vm506_vm2, %v1137_v48  ;;  %v1467_v24 = vsel %vm1455_vm6, %v1451_v5, 0.0  ;;  %v1468_v8 = vsel %vm1456_vm7, %v1452_v7, 0.0  ;;  %2231 = vmatpush3.bf16.msra.mxu1 %v2228_v9 }
 0x204   : > { %2129 = vmatpush3.msra.mxu0 %v1919_v42  ;;  %2130 = vmatprep.mubr.msk.f32.mxu0 %vm506_vm2, %v1118_v29 }
 0x205   : > { %2217 = vmatprep.subr.bf16.mxu0 %v2216_v49  ;;  %2176 = vmatprep.subr.mxu1 %v1703_v23 }
 0x207   : > { %2131 = vmatmul.mubr.msk.f32.vlgmr.msra.gmra.mrb[4].mxu0 %vm506_vm2, %v1119_v28  ;;  %2177 = vmatpush3.msra.mxu1 %v1703_v23 }
 0x208   : > { %2219 = vmatpush3.bf16.msra.mxu0 %v2216_v49  ;;  %2133 = vmatprep.mubr.msk.f32.mxu0 %vm506_vm2, %v1120_v37 }
 0x209   : > { %2140 = vmatprep.subr.mxu0 %v1933_v50 }
 0x20b   : > { %2134 = vmatmul.mubr.msk.f32.gmra.mrb[6].mxu0 %vm506_vm2, %v1121_v36 }
 0x20c   : > { %2141 = vmatpush3.msra.mxu0 %v1933_v50  ;;  %2142 = vmatprep.mubr.msk.f32.mxu0 %vm506_vm2, %v1340_v55 }
 0x20d   : > { %2221 = vmatprep.subr.bf16.mxu0 %v2220_v54 }
 0x20f   : > { %2143 = vmatmul.mubr.msk.f32.vlgmr.msra.gmra.mrb[4].mxu0 %vm506_vm2, %v1341_v58 }
 0x210   : > { %2223 = vmatpush3.bf16.msra.mxu0 %v2220_v54  ;;  %2145 = vmatprep.mubr.msk.f32.mxu0 %vm506_vm2, %v1342_v62 }
 0x211   : > { %2152 = vmatprep.subr.mxu0 %v1940_v59 }
 0x213   : > { %2146 = vmatmul.mubr.msk.f32.gmra.mrb[6].mxu0 %vm506_vm2, %v1343_v2 }
 0x214   : > { %2153 = vmatpush3.msra.mxu0 %v1940_v59  ;;  %2154 = vmatprep.mubr.msk.f32.mxu0 %vm506_vm2, %v1465_v3 }
 0x215   : > { %2225 = vmatprep.subr.bf16.mxu0 %v2224_v1 }
 0x217   : > { %2155 = vmatmul.mubr.msk.f32.vlgmr.msra.gmra.mrb[4].mxu0 %vm506_vm2, %v1466_v6 }
 0x218   : > { %2157 = vmatprep.mubr.msk.f32.mxu0 %vm506_vm2, %v1467_v24  ;;  %2227 = vmatpush3.bf16.msra.mxu0 %v2224_v1 }
 0x219   : > { %2164 = vmatprep.subr.mxu0 %v1592_v27 }
 0x21b   : > { %2158 = vmatmul.mubr.msk.f32.gmra.mrb[6].mxu0 %vm506_vm2, %v1468_v8 }
 0x21c   : > { %2165 = vmatpush3.msra.mxu0 %v1592_v27 }
 0x2ea   : > { %v2156_v11 = vpop.f32.mrb[4].mxu0 }
 0x2eb   : > { %v1583_v12 = vadd.f32 %v2156_v11, %v1946_v10  ;;  %v1551_v13 = vpop.f32.mrb[5].mxu0 }
 0x2ec   : > { %v1582_v14 = vadd.f32 %v1946_v10, %v1551_v13 }
 0x2ed   : > { %v1587_v17 = vmax.f32 %v1583_v12, 0.0 }
 0x2ee   : > { %v1586_v15 = vmax.f32 %v1582_v14, 0.0  ;;  %v2159_v16 = vpop.f32.mrb[6].mxu0 }
 0x2ef   : > { %v1585_v18 = vadd.f32 %v2159_v16, %v1946_v10  ;;  %v1561_v19 = vpop.f32.mrb[7].mxu0 }
 0x2f0   : > { %v1584_v20 = vadd.f32 %v1946_v10, %v1561_v19  ;;  %2166 = vmatprep.mubr.msk.f32.mxu0 %vm506_vm2, %v1586_v15 }
 0x2f1   : > { %2167 = vmatmul.mubr.msk.f32.vlgmr.msra.gmra.mrb[8].mxu0 %vm506_vm2, %v1587_v17  ;;  %v1589_v22 = vmax.f32 %v1585_v18, 0.0 }
 0x2f2   : > { %v1588_v21 = vmax.f32 %v1584_v20, 0.0 }
 0x2f4   : > { %2169 = vmatprep.mubr.msk.f32.mxu0 %vm506_vm2, %v1588_v21 }
 0x2f5   : > { %2170 = vmatmul.mubr.msk.f32.gmra.mrb[10].mxu0 %vm506_vm2, %v1589_v22 }
 0x3c4   : > { %v2168_v26 = vpop.f32.mrb[8].mxu0 }
 0x3c5   : > { %v1684_v28 = vadd.f32 %v2168_v26, %v1947_v25  ;;  %v1678_v29 = vpop.f32.mrb[9].mxu0 }
 0x3c6   : > { %v1679_v30 = vadd.f32 %v1947_v25, %v1678_v29 }
 0x3c7   : > { %v1698_v35 = vmax.f32 %v1684_v28, 0.0 }
 0x3c8   : > { %v1697_v33 = vmax.f32 %v1679_v30, 0.0  ;;  %v2171_v34 = vpop.f32.mrb[10].mxu0 }
 0x3c9   : > { %v1694_v36 = vadd.f32 %v2171_v34, %v1947_v25  ;;  %v1688_v37 = vpop.f32.mrb[11].mxu0 }
 0x3ca   : > { %v1689_v38 = vadd.f32 %v1947_v25, %v1688_v37  ;;  %2178 = vmatprep.mubr.msk.f32.mxu1 %vm506_vm2, %v1697_v33 }
 0x3cb   : > { %2179 = vmatmul.mubr.msk.f32.vlgmr.msra.gmra.mrb[4].mxu1 %vm506_vm2, %v1698_v35  ;;  %v1700_v40 = vmax.f32 %v1694_v36, 0.0 }
 0x3cc   : > { %v1699_v39 = vmax.f32 %v1689_v38, 0.0 }
 0x3ce   : > { %2181 = vmatprep.mubr.msk.f32.mxu1 %vm506_vm2, %v1699_v39 }
 0x3cf   : > { %2182 = vmatmul.mubr.msk.f32.gmra.mrb[6].mxu1 %vm506_vm2, %v1700_v40 }
 0x49e   : > { %v2180_v42 = vpop.f32.mrb[4].mxu1 }
 0x49f   : > { %v1789_v43 = vpop.f32.mrb[5].mxu1  ;;  %v1795_v45 = vadd.f32 %v2180_v42, %v1952_v41 }
 0x4a0   : > { %v1790_v44 = vadd.f32 %v1952_v41, %v1789_v43 }
 0x4a1   : > { %1810 = vst.msk [vmem:[%s2342_s18 + $0x8] sm:$0xff] %vm1808_vm8, %v1795_v45 }
 0x4a2   : > { %1809 = vst.msk [vmem:[%s2342_s18] sm:$0xff] %vm1808_vm8, %v1790_v44  ;;  %v2183_v46 = vpop.f32.mrb[6].mxu1 }
 0x4a3   : > { %v1799_v47 = vpop.f32.mrb[7].mxu1  ;;  %v1805_v49 = vadd.f32 %v2183_v46, %v1952_v41 }
 0x4a4   : > { %v1800_v48 = vadd.f32 %v1952_v41, %v1799_v47 }
 0x4a5   : > { %1812 = vst.msk [vmem:[%s2342_s18 + $0x18] sm:$0xff] %vm1808_vm8, %v1805_v49 }
 0x4a6   : > { %1811 = vst.msk [vmem:[%s2342_s18 + $0x10] sm:$0xff] %vm1808_vm8, %v1800_v48 }
 0x4a7 PF: > { %s19_s30 = sadd.s32 1, %s2275_s30  }
 0x4a8   : > { %p16_p5 = scmp.ge.s32.totalorder %s19_s30, 4  }
 0x4aa   :  { %18 = sbr.rel (!%p16_p5) target bundleno = 1 (0x1), region = 99 }

</bundles_post_ra>
